<compile_context>
chip_gen: v7x
topology: tpu7x:2x2x1
jax: 0.10.0
libtpu: 0.0.40
codegen_flags: <defaults>
</compile_context>

<pallas_src>
import jax
import jax.numpy as jnp
import numpy as np
from jax.experimental import pallas as pl
from jax.experimental.pallas import tpu as pltpu


# ----------------------------- model dims -----------------------------------
BATCH = 2
POS_PRED_DIM = 8          # "seq_len" / number of position classes
HEAD_DIR_DIM = 2
OBJ_DIST_DIM = 3
ACTION_DIM = 3
HIDDEN_DIM = 32
INPUT_DIM = POS_PRED_DIM + HEAD_DIR_DIM + OBJ_DIST_DIM + ACTION_DIM  # 16

# fused head output layout (softmax heads first -> contiguous logit block)
OFF_ACTION = 0
OFF_POS = OFF_ACTION + ACTION_DIM            # 3
OFF_HEAD = OFF_POS + POS_PRED_DIM            # 11
OFF_OBJ = OFF_HEAD + HEAD_DIR_DIM            # 13
LOGIT_LANES = OFF_OBJ + OBJ_DIST_DIM         # 16 (softmax-head logits)
OFF_VALUE = LOGIT_LANES                      # 16
OFF_INFO = OFF_VALUE + 1                     # 17
OFF_EFFORT = OFF_INFO + 1                    # 18
OFF_CONF = OFF_EFFORT + 1                    # 19 (written by the kernel)
HEAD_OUT = OFF_CONF                          # 19 real head columns
OUT_WIDTH = 128                              # lane-dense output width
NUM_CONF_HEADS = 4

# fragile invariant guarded per review: confidence goes into the first padding
# column of the fused head output, which must be exactly zero.
assert OFF_CONF == HEAD_OUT and OFF_CONF < OUT_WIDTH

# ----------------------- packed parameter slab layout ------------------------
GATE_TILE = 128                              # each GRU gate gets its own tile
SLAB_COLS = 3 * GATE_TILE                    # 384 (r | z | n tiles)

ROW_W_POS = 0                                # (8,  384) W_ih rows for position
ROW_W_DIR = 8                                # (2,  384) W_ih rows for direction
ROW_W_OBJ = 16                               # (3,  384) W_ih rows for obj_dist
ROW_W_ACT = 24                               # (3,  384) W_ih rows for prev_opt
ROW_BGATES = 32                              # (1,  384) gate biases (b_hh folded for r,z)
ROW_BHN = 33                                 # (1,  128) b_hn (multiplied by r)
ROW_BALL = 34                                # (1,  128) fused head bias
ROW_INVT = 35                                # (1,  128) exp(-log_temperature), replicated
ROW_CONF1H = 36                              # (1,  128) 1.0 at lane OFF_CONF
ROW_SEGMASK = 40                             # (4,   16) 0 in-segment, -1e30 elsewhere
ROW_WALL = 48                                # (32, 128) fused head weights
SLAB_ROWS = ROW_WALL + HIDDEN_DIM            # 80

NEG_BIG = -1.0e30                            # finite "-inf" (avoids inf-inf NaN)


def agent_kernel(pos_ref, dir_ref, obj_ref, act_ref, p_ref, out_ref):
  """Single-block kernel: in-kernel concat + GRU step (h0 = 0) + fused heads
  + temperature-calibrated confidence, all from one packed parameter slab."""
  f32 = jnp.float32
  P = p_ref

  # ---- input-side GRU matmul, gate-tiled (B, 384); the wrapper concat is
  # replaced by 4 small dots against row blocks of the packed slab.
  gi = (jnp.dot(pos_ref[...], P[ROW_W_POS:ROW_W_POS + POS_PRED_DIM, :],
                preferred_element_type=f32)
        + jnp.dot(dir_ref[...], P[ROW_W_DIR:ROW_W_DIR + HEAD_DIR_DIM, :],
                  preferred_element_type=f32)
        + jnp.dot(obj_ref[...], P[ROW_W_OBJ:ROW_W_OBJ + OBJ_DIST_DIM, :],
                  preferred_element_type=f32)
        + jnp.dot(act_ref[...], P[ROW_W_ACT:ROW_W_ACT + ACTION_DIM, :],
                  preferred_element_type=f32)
        + P[ROW_BGATES:ROW_BGATES + 1, :])                  # (B, 384)

  # ---- GRU step, PyTorch gate order (r, z, n); h0 == 0 so the hidden-side
  # matmul reduces to its bias (b_hh folded into r/z bias; b_hn kept separate).
  # Gate slices are 128-lane-tile aligned -> pure VPU work, no lane rotates.
  r = jax.nn.sigmoid(gi[:, 0:GATE_TILE])
  z = jax.nn.sigmoid(gi[:, GATE_TILE:2 * GATE_TILE])
  n = jnp.tanh(gi[:, 2 * GATE_TILE:3 * GATE_TILE]
               + r * P[ROW_BHN:ROW_BHN + 1, 0:GATE_TILE])
  h = (1.0 - z) * n                                         # (B, 128); z*h0 == 0

  # ---- fused linear heads (padded to 128 lanes; padding columns are zero) ----
  all_out = (jnp.dot(h[:, 0:HIDDEN_DIM],
                     P[ROW_WALL:ROW_WALL + HIDDEN_DIM, 0:OUT_WIDTH],
                     preferred_element_type=f32)
             + P[ROW_BALL:ROW_BALL + 1, 0:OUT_WIDTH])       # (B, 128)

  # ---- temperature-calibrated softmax-max confidence, all 4 heads at once.
  # inv_temp and the segment mask are precomputed data in the slab.
  scaled = all_out[:, 0:LOGIT_LANES] * P[ROW_INVT:ROW_INVT + 1, 0:LOGIT_LANES]
  segmask = P[ROW_SEGMASK:ROW_SEGMASK + NUM_CONF_HEADS, 0:LOGIT_LANES]  # (4,16)
  masked = scaled[:, None, :] + segmask[None, :, :]         # (B, 4, 16)
  m = jnp.max(masked, axis=-1, keepdims=True)               # (B, 4, 1)
  denom = jnp.sum(jnp.exp(masked - m), axis=-1)             # (B, 4); off-seg -> 0
  # max softmax prob = exp(0)/denom ; confidence = mean over the 4 heads
  conf = jnp.sum(1.0 / denom, axis=-1, keepdims=True) * 0.25  # (B, 1)

  # ---- single unmasked lane-dense store; conf merged via one-hot slab row ----
  out_ref[...] = all_out + conf * P[ROW_CONF1H:ROW_CONF1H + 1, 0:OUT_WIDTH]


def prepare_params(params):
  """One-time parameter glue: pack EVERYTHING into one (80, 384) f32 slab."""
  H = HIDDEN_DIM
  w_ih_t = params["w_ih"].T.astype(jnp.float32)             # (D, 3H), gates r,z,n
  b_ih = params["b_ih"].astype(jnp.float32)
  b_hh = params["b_hh"].astype(jnp.float32)

  slab = jnp.zeros((SLAB_ROWS, SLAB_COLS), jnp.float32)

  # W_ih, split by input block (rows) and gate-tiled (columns).
  row_starts = (ROW_W_POS, ROW_W_DIR, ROW_W_OBJ, ROW_W_ACT)
  blk_sizes = (POS_PRED_DIM, HEAD_DIR_DIM, OBJ_DIST_DIM, ACTION_DIM)
  in_off = 0
  for row0, sz in zip(row_starts, blk_sizes):
    for g in range(3):
      slab = slab.at[row0:row0 + sz, g * GATE_TILE:g * GATE_TILE + H].set(
          w_ih_t[in_off:in_off + sz, g * H:(g + 1) * H])
    in_off += sz

  # gate biases: fold b_hh into r/z; keep b_hn separate (multiplied by r).
  gate_bias = (b_ih[0:H] + b_hh[0:H],            # r
               b_ih[H:2 * H] + b_hh[H:2 * H],    # z
               b_ih[2 * H:3 * H])                # n (input side only)
  for g in range(3):
    slab = slab.at[ROW_BGATES, g * GATE_TILE:g * GATE_TILE + H].set(gate_bias[g])
  slab = slab.at[ROW_BHN, 0:H].set(b_hh[2 * H:3 * H])

  # fused heads -> (H, 19) weights, (19,) bias; padding columns stay exactly 0.
  w_heads = jnp.concatenate(
      [params["w_actor"].T, params["w_position"].T, params["w_head_dir"].T,
       params["w_obj_dist"].T, params["w_critic"].T,
       params["w_info_value"].T, params["w_effort"].T], axis=1)  # (H, 19)
  b_heads = jnp.concatenate(
      [params["b_actor"], params["b_position"], params["b_head_dir"],
       params["b_obj_dist"], params["b_critic"],
       params["b_info_value"], params["b_effort"]], axis=0)      # (19,)
  slab = slab.at[ROW_WALL:ROW_WALL + H, 0:HEAD_OUT].set(w_heads.astype(jnp.float32))
  slab = slab.at[ROW_BALL, 0:HEAD_OUT].set(b_heads.astype(jnp.float32))

  # precomputed 1/temperature, replicated across lanes.
  inv_temp = jnp.exp(-params["log_temperature"].astype(jnp.float32)[0])
  slab = slab.at[ROW_INVT, 0:GATE_TILE].set(inv_temp)

  # confidence one-hot column.
  slab = slab.at[ROW_CONF1H, OFF_CONF].set(1.0)

  # confidence segment mask: 0.0 inside each head's logit segment, -1e30 outside.
  bounds = ((OFF_ACTION, OFF_POS), (OFF_POS, OFF_HEAD),
            (OFF_HEAD, OFF_OBJ), (OFF_OBJ, LOGIT_LANES))
  seg = np.full((NUM_CONF_HEADS, LOGIT_LANES), NEG_BIG, np.float32)
  for s, (lo, hi) in enumerate(bounds):
    seg[s, lo:hi] = 0.0
  slab = slab.at[ROW_SEGMASK:ROW_SEGMASK + NUM_CONF_HEADS, 0:LOGIT_LANES].set(
      jnp.asarray(seg))

  return slab


def _fused_call(position, direction, obj_distances, prev_option, slab):
  """pallas_call wrapper returning the fused lane-dense (B, 128) output slab."""
  B = position.shape[0]
  vmem = pl.BlockSpec(memory_space=pltpu.MemorySpace.VMEM)
  return pl.pallas_call(
      agent_kernel,
      out_shape=jax.ShapeDtypeStruct((B, OUT_WIDTH), jnp.float32),
      in_specs=[vmem, vmem, vmem, vmem, vmem],
      out_specs=vmem,
  )(position.astype(jnp.float32), direction.astype(jnp.float32),
    obj_distances.astype(jnp.float32), prev_option.astype(jnp.float32), slab)


# Preferred fast path: consumers that know the column offsets should use this
# and avoid the 8-way output fan-out below.
agent_forward_fused = jax.jit(_fused_call)


@jax.jit
def agent_forward(position, direction, obj_distances, prev_option, slab):
  """Spec-compatible wrapper: returns the 8 outputs of Agent.forward."""
  out = _fused_call(position, direction, obj_distances, prev_option, slab)
  action_logits = out[:, OFF_ACTION:OFF_ACTION + ACTION_DIM]
  pos_logits = out[:, OFF_POS:OFF_POS + POS_PRED_DIM]
  head_logits = out[:, OFF_HEAD:OFF_HEAD + HEAD_DIR_DIM]
  obj_distance_logits = out[:, OFF_OBJ:OFF_OBJ + OBJ_DIST_DIM]
  value = out[:, OFF_VALUE:OFF_VALUE + 1]                   # (B, 1)
  info_value = out[:, OFF_INFO]                             # (B,)  squeeze(-1)
  effort_pred = out[:, OFF_EFFORT]                          # (B,)
  confidence = out[:, OFF_CONF]                             # (B,)
  return (action_logits, value, pos_logits, head_logits, obj_distance_logits,
          confidence, info_value, effort_pred)

# TODO(synk): the module's forward() is a single step with h0 reset to zero on
# every call, so there is no rollout loop to fold here; if a caller steps the
# agent over T steps with a carried hidden state, add a time grid axis
# ("arbitrary"), keep h in a VMEM scratch accumulator, use constant index_maps
# for the slab so weights stay resident, and emit a (T, B, 128) output slab.
# TODO(synk): the optional `belief` input branch is not implemented (kernel
# covers the belief=None path used by VTE / the default forward).


def init_params(key):
  """Deterministic synthetic parameters matching nn.GRU / nn.Linear shapes."""
  def _lin(k, out_dim, in_dim):
    kw, kb = jax.random.split(k)
    s = 1.0 / jnp.sqrt(in_dim)
    return (jax.random.uniform(kw, (out_dim, in_dim), jnp.float32, -s, s),
            jax.random.uniform(kb, (out_dim,), jnp.float32, -s, s))

  keys = jax.random.split(key, 12)
  s = 1.0 / jnp.sqrt(HIDDEN_DIM)
  params = {
      "w_ih": jax.random.uniform(keys[0], (3 * HIDDEN_DIM, INPUT_DIM),
                                 jnp.float32, -s, s),
      "w_hh": jax.random.uniform(keys[1], (3 * HIDDEN_DIM, HIDDEN_DIM),
                                 jnp.float32, -s, s),
      "b_ih": jax.random.uniform(keys[2], (3 * HIDDEN_DIM,), jnp.float32, -s, s),
      "b_hh": jax.random.uniform(keys[3], (3 * HIDDEN_DIM,), jnp.float32, -s, s),
      "log_temperature": jnp.zeros((1,), jnp.float32),
  }
  params["w_actor"], params["b_actor"] = _lin(keys[4], ACTION_DIM, HIDDEN_DIM)
  params["w_critic"], params["b_critic"] = _lin(keys[5], 1, HIDDEN_DIM)
  params["w_position"], params["b_position"] = _lin(keys[6], POS_PRED_DIM, HIDDEN_DIM)
  params["w_head_dir"], params["b_head_dir"] = _lin(keys[7], HEAD_DIR_DIM, HIDDEN_DIM)
  params["w_obj_dist"], params["b_obj_dist"] = _lin(keys[8], OBJ_DIST_DIM, HIDDEN_DIM)
  params["w_info_value"], params["b_info_value"] = _lin(keys[9], 1, HIDDEN_DIM)
  params["w_effort"], params["b_effort"] = _lin(keys[10], 1, HIDDEN_DIM)
  return params


def _reference_forward(position, direction, obj_distances, prev_option, params):
  """Pure-JAX reference mirroring the PyTorch forward (for correctness check)."""
  x = jnp.concatenate([position, direction, obj_distances, prev_option], axis=-1)
  H = HIDDEN_DIM
  h0 = jnp.zeros((x.shape[0], H), jnp.float32)
  gi = x @ params["w_ih"].T + params["b_ih"]
  gh = h0 @ params["w_hh"].T + params["b_hh"]
  r = jax.nn.sigmoid(gi[:, :H] + gh[:, :H])
  z = jax.nn.sigmoid(gi[:, H:2 * H] + gh[:, H:2 * H])
  n = jnp.tanh(gi[:, 2 * H:] + r * gh[:, 2 * H:])
  h = (1 - z) * n + z * h0

  def lin(name):
    return h @ params["w_" + name].T + params["b_" + name]

  a, v, p, hd, o = lin("actor"), lin("critic"), lin("position"), lin("head_dir"), lin("obj_dist")
  iv, ef = lin("info_value")[:, 0], lin("effort")[:, 0]
  temp = jnp.exp(params["log_temperature"][0])
  conf = (jnp.max(jax.nn.softmax(a / temp, -1), -1)
          + jnp.max(jax.nn.softmax(p / temp, -1), -1)
          + jnp.max(jax.nn.softmax(hd / temp, -1), -1)
          + jnp.max(jax.nn.softmax(o / temp, -1), -1)) / 4.0
  return a, v, p, hd, o, conf, iv, ef


if __name__ == "__main__":
  key = jax.random.PRNGKey(0)
  k_params, k_pos, k_dir, k_obj, k_act = jax.random.split(key, 5)
  params = init_params(k_params)
  slab = prepare_params(params)       # one-time glue, not per call

  # deterministic example inputs
  position = jax.nn.one_hot(
      jax.random.randint(k_pos, (BATCH,), 0, POS_PRED_DIM), POS_PRED_DIM,
      dtype=jnp.float32)
  direction = jax.nn.one_hot(
      jax.random.randint(k_dir, (BATCH,), 0, HEAD_DIR_DIM), HEAD_DIR_DIM,
      dtype=jnp.float32)
  obj_distances = jax.random.uniform(k_obj, (BATCH, OBJ_DIST_DIM), jnp.float32)
  prev_option = jax.nn.one_hot(
      jax.random.randint(k_act, (BATCH,), 0, ACTION_DIM), ACTION_DIM,
      dtype=jnp.float32)

  outs = agent_forward(position, direction, obj_distances, prev_option, slab)
  outs = jax.block_until_ready(outs)

  refs = _reference_forward(position, direction, obj_distances, prev_option, params)
  for got, ref in zip(outs, refs):
    assert got.shape == ref.shape, (got.shape, ref.shape)
    assert jnp.allclose(got, ref, atol=1e-5, rtol=1e-5), (got, ref)

  print("KERNEL_OK")
</pallas_src>

<mosaic_0001>
module attributes {stable_mosaic.version = 11 : i64} {
  func.func @agent_kernel(%arg0: memref<2x8xf32, #tpu.memory_space<vmem>>, %arg1: memref<2x2xf32, #tpu.memory_space<vmem>>, %arg2: memref<2x3xf32, #tpu.memory_space<vmem>>, %arg3: memref<2x3xf32, #tpu.memory_space<vmem>>, %arg4: memref<80x384xf32, #tpu.memory_space<vmem>>, %arg5: memref<2x128xf32, #tpu.memory_space<vmem>>) attributes {dimension_semantics = [], scalar_prefetch = 0 : i64, scratch_operands = 0 : i64, tpu.core_type = #tpu.core_type<tc>} {
    %c0 = arith.constant 0 : index
    %c0_0 = arith.constant 0 : index
    %0 = vector.load %arg0[%c0, %c0_0] : memref<2x8xf32, #tpu.memory_space<vmem>>, vector<2x8xf32>
    %c0_1 = arith.constant 0 : index
    %c0_2 = arith.constant 0 : index
    %1 = vector.load %arg4[%c0_1, %c0_2] : memref<80x384xf32, #tpu.memory_space<vmem>>, vector<8x384xf32>
    %cst = arith.constant dense<0.000000e+00> : vector<2x384xf32>
    %2 = tpu.matmul %0, %1, %cst {dimension_numbers = #tpu.dot_dimension_numbers<[1], [0], [0], [1], [0, 0, 1, 1], [], []>} : vector<2x8xf32>, vector<8x384xf32>, vector<2x384xf32> -> vector<2x384xf32>
    %c0_3 = arith.constant 0 : index
    %c0_4 = arith.constant 0 : index
    %3 = vector.load %arg1[%c0_3, %c0_4] : memref<2x2xf32, #tpu.memory_space<vmem>>, vector<2x2xf32>
    %c8 = arith.constant 8 : index
    %c0_5 = arith.constant 0 : index
    %4 = vector.load %arg4[%c8, %c0_5] : memref<80x384xf32, #tpu.memory_space<vmem>>, vector<2x384xf32>
    %cst_6 = arith.constant dense<0.000000e+00> : vector<2x384xf32>
    %5 = tpu.matmul %3, %4, %cst_6 {dimension_numbers = #tpu.dot_dimension_numbers<[1], [0], [0], [1], [0, 0, 1, 1], [], []>} : vector<2x2xf32>, vector<2x384xf32>, vector<2x384xf32> -> vector<2x384xf32>
    %6 = arith.addf %2, %5 : vector<2x384xf32>
    %c0_7 = arith.constant 0 : index
    %c0_8 = arith.constant 0 : index
    %7 = vector.load %arg2[%c0_7, %c0_8] : memref<2x3xf32, #tpu.memory_space<vmem>>, vector<2x3xf32>
    %c16 = arith.constant 16 : index
    %c0_9 = arith.constant 0 : index
    %8 = vector.load %arg4[%c16, %c0_9] : memref<80x384xf32, #tpu.memory_space<vmem>>, vector<3x384xf32>
    %cst_10 = arith.constant dense<0.000000e+00> : vector<2x384xf32>
    %9 = tpu.matmul %7, %8, %cst_10 {dimension_numbers = #tpu.dot_dimension_numbers<[1], [0], [0], [1], [0, 0, 1, 1], [], []>} : vector<2x3xf32>, vector<3x384xf32>, vector<2x384xf32> -> vector<2x384xf32>
    %10 = arith.addf %6, %9 : vector<2x384xf32>
    %c0_11 = arith.constant 0 : index
    %c0_12 = arith.constant 0 : index
    %11 = vector.load %arg3[%c0_11, %c0_12] : memref<2x3xf32, #tpu.memory_space<vmem>>, vector<2x3xf32>
    %c24 = arith.constant 24 : index
    %c0_13 = arith.constant 0 : index
    %12 = vector.load %arg4[%c24, %c0_13] : memref<80x384xf32, #tpu.memory_space<vmem>>, vector<3x384xf32>
    %cst_14 = arith.constant dense<0.000000e+00> : vector<2x384xf32>
    %13 = tpu.matmul %11, %12, %cst_14 {dimension_numbers = #tpu.dot_dimension_numbers<[1], [0], [0], [1], [0, 0, 1, 1], [], []>} : vector<2x3xf32>, vector<3x384xf32>, vector<2x384xf32> -> vector<2x384xf32>
    %14 = arith.addf %10, %13 : vector<2x384xf32>
    %c32 = arith.constant 32 : index
    %c0_15 = arith.constant 0 : index
    %15 = vector.load %arg4[%c32, %c0_15] : memref<80x384xf32, #tpu.memory_space<vmem>>, vector<1x384xf32>
    %16 = vector.broadcast %15 : vector<1x384xf32> to vector<2x384xf32>
    %17 = arith.addf %14, %16 : vector<2x384xf32>
    %18 = vector.extract_strided_slice %17 {offsets = [0, 0], sizes = [2, 128], strides = [1, 1]} : vector<2x384xf32> to vector<2x128xf32>
    %19 = arith.negf %18 : vector<2x128xf32>
    %20 = math.exp %19 : vector<2x128xf32>
    %cst_16 = arith.constant 1.000000e+00 : f32
    %21 = vector.broadcast %cst_16 : f32 to vector<2x128xf32>
    %22 = arith.addf %21, %20 : vector<2x128xf32>
    %23 = arith.divf %21, %22 : vector<2x128xf32>
    %24 = vector.extract_strided_slice %17 {offsets = [0, 128], sizes = [2, 128], strides = [1, 1]} : vector<2x384xf32> to vector<2x128xf32>
    %25 = arith.negf %24 : vector<2x128xf32>
    %26 = math.exp %25 : vector<2x128xf32>
    %cst_17 = arith.constant 1.000000e+00 : f32
    %27 = vector.broadcast %cst_17 : f32 to vector<2x128xf32>
    %28 = arith.addf %27, %26 : vector<2x128xf32>
    %29 = arith.divf %27, %28 : vector<2x128xf32>
    %30 = vector.extract_strided_slice %17 {offsets = [0, 256], sizes = [2, 128], strides = [1, 1]} : vector<2x384xf32> to vector<2x128xf32>
    %c33 = arith.constant 33 : index
    %c0_18 = arith.constant 0 : index
    %31 = vector.load %arg4[%c33, %c0_18] : memref<80x384xf32, #tpu.memory_space<vmem>>, vector<1x128xf32>
    %32 = vector.broadcast %31 : vector<1x128xf32> to vector<2x128xf32>
    %33 = arith.mulf %23, %32 : vector<2x128xf32>
    %34 = arith.addf %30, %33 : vector<2x128xf32>
    %35 = math.tanh %34 : vector<2x128xf32>
    %cst_19 = arith.constant 1.000000e+00 : f32
    %36 = vector.broadcast %cst_19 : f32 to vector<2x128xf32>
    %37 = arith.subf %36, %29 : vector<2x128xf32>
    %38 = arith.mulf %37, %35 : vector<2x128xf32>
    %39 = vector.extract_strided_slice %38 {offsets = [0, 0], sizes = [2, 32], strides = [1, 1]} : vector<2x128xf32> to vector<2x32xf32>
    %c48 = arith.constant 48 : index
    %c0_20 = arith.constant 0 : index
    %40 = vector.load %arg4[%c48, %c0_20] : memref<80x384xf32, #tpu.memory_space<vmem>>, vector<32x128xf32>
    %cst_21 = arith.constant dense<0.000000e+00> : vector<2x128xf32>
    %41 = tpu.matmul %39, %40, %cst_21 {dimension_numbers = #tpu.dot_dimension_numbers<[1], [0], [0], [1], [0, 0, 1, 1], [], []>} : vector<2x32xf32>, vector<32x128xf32>, vector<2x128xf32> -> vector<2x128xf32>
    %c34 = arith.constant 34 : index
    %c0_22 = arith.constant 0 : index
    %42 = vector.load %arg4[%c34, %c0_22] : memref<80x384xf32, #tpu.memory_space<vmem>>, vector<1x128xf32>
    %43 = vector.broadcast %42 : vector<1x128xf32> to vector<2x128xf32>
    %44 = arith.addf %41, %43 : vector<2x128xf32>
    %45 = vector.extract_strided_slice %44 {offsets = [0, 0], sizes = [2, 16], strides = [1, 1]} : vector<2x128xf32> to vector<2x16xf32>
    %c35 = arith.constant 35 : index
    %c0_23 = arith.constant 0 : index
    %46 = vector.load %arg4[%c35, %c0_23] : memref<80x384xf32, #tpu.memory_space<vmem>>, vector<1x16xf32>
    %47 = vector.broadcast %46 : vector<1x16xf32> to vector<2x16xf32>
    %48 = arith.mulf %45, %47 : vector<2x16xf32>
    %c40 = arith.constant 40 : index
    %c0_24 = arith.constant 0 : index
    %49 = vector.load %arg4[%c40, %c0_24] : memref<80x384xf32, #tpu.memory_space<vmem>>, vector<4x16xf32>
    %50 = vector.shape_cast %48 : vector<2x16xf32> to vector<2x1x16xf32>
    %51 = vector.shape_cast %49 : vector<4x16xf32> to vector<1x4x16xf32>
    %52 = vector.broadcast %50 : vector<2x1x16xf32> to vector<2x4x16xf32>
    %53 = vector.broadcast %51 : vector<1x4x16xf32> to vector<2x4x16xf32>
    %54 = arith.addf %52, %53 : vector<2x4x16xf32>
    %cst_25 = arith.constant dense<0xFF800000> : vector<2x4xf32>
    %55 = vector.multi_reduction <maximumf>, %54, %cst_25 [2] : vector<2x4x16xf32> to vector<2x4xf32>
    %56 = vector.shape_cast %55 : vector<2x4xf32> to vector<2x4x1xf32>
    %57 = vector.broadcast %56 : vector<2x4x1xf32> to vector<2x4x16xf32>
    %58 = arith.subf %54, %57 : vector<2x4x16xf32>
    %59 = math.exp %58 : vector<2x4x16xf32>
    %cst_26 = arith.constant dense<0.000000e+00> : vector<2x4xf32>
    %60 = vector.multi_reduction <add>, %59, %cst_26 [2] : vector<2x4x16xf32> to vector<2x4xf32>
    %cst_27 = arith.constant 1.000000e+00 : f32
    %61 = vector.broadcast %cst_27 : f32 to vector<2x4xf32>
    %62 = arith.divf %61, %60 : vector<2x4xf32>
    %cst_28 = arith.constant dense<0.000000e+00> : vector<2xf32>
    %63 = vector.multi_reduction <add>, %62, %cst_28 [1] : vector<2x4xf32> to vector<2xf32>
    %64 = vector.shape_cast %63 : vector<2xf32> to vector<2x1xf32>
    %cst_29 = arith.constant 2.500000e-01 : f32
    %65 = vector.broadcast %cst_29 : f32 to vector<2x1xf32>
    %66 = arith.mulf %64, %65 : vector<2x1xf32>
    %c36 = arith.constant 36 : index
    %c0_30 = arith.constant 0 : index
    %67 = vector.load %arg4[%c36, %c0_30] : memref<80x384xf32, #tpu.memory_space<vmem>>, vector<1x128xf32>
    %68 = vector.broadcast %66 : vector<2x1xf32> to vector<2x128xf32>
    %69 = vector.broadcast %67 : vector<1x128xf32> to vector<2x128xf32>
    %70 = arith.mulf %68, %69 : vector<2x128xf32>
    %71 = arith.addf %44, %70 : vector<2x128xf32>
    %c0_31 = arith.constant 0 : index
    %c0_32 = arith.constant 0 : index
    %72 = vector.load %arg5[%c0_31, %c0_32] : memref<2x128xf32, #tpu.memory_space<vmem>>, vector<2x128xf32>
    tpu.vector_store %arg5[%c0_31, %c0_32], %71 {strides = array<i32>} : memref<2x128xf32, #tpu.memory_space<vmem>>, vector<2x128xf32>,
    return
  }
}

</mosaic_0001>

<bundles_post_ra>
// kernel: agent_forward.1
= control target key start
LH: loop header
LB: loop body
LE: loop exit
PB: predicated region body
PF: predicated region fallthrough
CT: control target
= control target key end

     0   :  { %10 = vsyncpa [#allocation3], 0  ;;  %s1156_s0 = inlined_call_operand.vmem [shape: f32[2,8], index: 0, kind: input, shape index: {}]   ;;  %s1157_s1 = inlined_call_operand.vmem [shape: f32[2,2], index: 1, kind: input, shape index: {}]   ;;  %s1158_s2 = inlined_call_operand.vmem [shape: f32[2,3], index: 2, kind: input, shape index: {}]   ;;  %s1159_s3 = inlined_call_operand.hbm [shape: f32[2,3], index: 3, kind: input, shape index: {}]   ;;  %s1160_s4 = inlined_call_operand.hbm [shape: f32[80,384], index: 4, kind: input, shape index: {}]   ;;  %s1161_s5 = inlined_call_operand.vmem [shape: f32[2,128], index: 5, kind: output, shape index: {}]  }
   0x1   :  { %11 = vsyncpa [#allocation5], 0  ;;  %s1035_s18 = smov [#allocation2]   ;;  %s1036_s20 = smov [#allocation4]  }
   0x2   :  { %s24_s19 = sshll.u32 %s1035_s18, 4  ;;  %s33_s21 = sshll.u32 %s1036_s20, 4  ;;  %s25_s19 = int_to_ptr.vmem [resolvable:$true] %s24_s19  ;;  %s1073_s21 = int_to_ptr.vmem [resolvable:$true] %s33_s21 }
   0x3   :  { %s987_s24 = scalar_lea.hbm %s1159_s3, 32 }
   0x4   :  { %p988_p0 = scmp.ne.s32.totalorder %s1159_s3, %s987_s24  ;;  %p991_p1 = scmp.lt.u32.totalorder %s987_s24, %s1159_s3 }
   0x6   :  { %p993_p2 = pnand %p991_p1, %p988_p0 }
   0x8   :  { %996 = shalt.err (!%p993_p2)
}
   0x9   :  { %s997_s29 = scalar_lea.vmem %s25_s19, 32  ;;  %p1002_p4 = scmp.lt.s32.totalorder %s25_s19, %s25_s19 }
   0xa   :  { %p998_p3 = scmp.ne.s32.totalorder %s25_s19, %s997_s29  ;;  %p1003_p5 = scmp.lt.s32.totalorder %s997_s29, %s997_s29 }
   0xc   :  { %p1004_p6 = por %p1003_p5, %p1002_p4 }
   0xe   :  { %p1005_p7 = pnand %p1004_p6, %p998_p3 }
  0x10   :  { %1008 = shalt.err (!%p1005_p7)
}
  0x11   :  { %27 = dma.hbm_to_vmem [thread:$0]  %s1159_s3, 32, %s25_s19, [#allocation3]  }
  0x12   :  { %s1009_s9 = scalar_lea.hbm %s1160_s4, 3840 }
  0x13   :  { %p1010_p8 = scmp.ne.s32.totalorder %s1160_s4, %s1009_s9  ;;  %p1013_p9 = scmp.lt.u32.totalorder %s1009_s9, %s1160_s4 }
  0x15   :  { %p1015_p10 = pnand %p1013_p9, %p1010_p8 }
  0x17   :  { %1018 = shalt.err (!%p1015_p10)
}
  0x18   :  { %s1019_s14 = scalar_lea.vmem %s1073_s21, 3840  ;;  %p1024_p12 = scmp.lt.s32.totalorder %s1073_s21, %s1073_s21 }
  0x19   :  { %p1020_p11 = scmp.ne.s32.totalorder %s1073_s21, %s1019_s14  ;;  %p1025_p13 = scmp.lt.s32.totalorder %s1019_s14, %s1019_s14 }
  0x1b   :  { %p1026_p0 = por %p1025_p13, %p1024_p12 }
  0x1d   :  { %p1027_p1 = pnand %p1026_p0, %p1020_p11 }
  0x1f   :  { %1030 = shalt.err (!%p1027_p1)
}
  0x20   :  { %s1037_s3 = smov 384   ;;  %s1038_s15 = smov 24  }
  0x21   :  { %39 = dma.hbm_to_vmem [thread:$0]  %s1160_s4, 3840, %s1073_s21, [#allocation5], %s1037_s3, %s1037_s3, %s1038_s15  }
  0x22   :  { %1031 = dma.done.wait [#allocation3], 32  }
  0x23   :  { %1032 = vsyncadd [#allocation3], 4294967264 }
  0x24   :  { %1033 = dma.done.wait [#allocation5], 3840  }
  0x25   :  { %1034 = vsyncadd [#allocation5], 4294963456  ;;  %v1039_v0 = vmov 0.0   ;;  %v48_v1 = vld [vmem:[#allocation4 + $0x8] sm:$0xff]  ;;  %v47_v2 = vld [vmem:[#allocation4] sm:$0xff]  ;;  %vm209_vm0 = vcmask 64512   ;;  %v679_v24 = vlaneseq }
  0x26   :  { %277 = vmatprep.mubr.f32.mxu0 %v1039_v0  ;;  %132 = vmatprep.mubr.f32.mxu1 %v1039_v0  ;;  %v46_v3 = vld [vmem:[%s1156_s0] sm:$0x3]  ;;  %vm362_vm1 = vcmask 1042432   ;;  %v356_v4 = vld [vmem:[#allocation4 + $0x38] sm:$0x7]  ;;  %vm58_vm2 = vcmask 1041408  }
  0x27   :  { %213 = vmatprep.subr.mxu0 %v48_v1  ;;  %v355_v5 = vld [vmem:[#allocation4 + $0x30] sm:$0x7]  ;;  %v52_v7 = vld [vmem:[#allocation4 + $0x20] sm:$0x3]  ;;  %v51_v8 = vld [vmem:[#allocation4 + $0x18] sm:$0x3] }
  0x28   :  { %214 = vmatpush1.msra.mxu0 %v47_v2  ;;  %v518_v6 = vld [vmem:[#allocation4 + $0x50] sm:$0x7]  ;;  %v50_v9 = vld [vmem:[%s1157_s1] sm:$0x3]  ;;  %vm54_vm3 = vcmask 15360   ;;  %885 = vmatprep.subr.msk.mxu1 %vm58_vm2, %v52_v7  ;;  %vm358_vm4 = vcmask 23552  }
  0x29   :  { %890 = vmatmul.mubr.msk.f32.vlgmr.msra.gmra.mrb[0].mxu0 %vm209_vm0, %v46_v3  ;;  %892 = vmatprep.subr.msk.mxu0 %vm362_vm1, %v356_v4  ;;  %v53_v10 = vld [vmem:[#allocation4 + $0x28] sm:$0x3]  ;;  %v354_v11 = vld [vmem:[%s1158_s2] sm:$0x3]  ;;  %vm1040_vm5 = vmmov 0   ;;  %v49_v13 = vld [vmem:[#allocation4 + $0x10] sm:$0xff] }
  0x2a   :  { %893 = vmatpush1.msk.msra.mxu0 %vm362_vm1, %v355_v5  ;;  %436 = vmatprep.mubr.f32.mxu0 %v1039_v0  ;;  %v517_v12 = vld [vmem:[#allocation4 + $0x48] sm:$0x7]  ;;  %v357_v14 = vld [vmem:[#allocation4 + $0x40] sm:$0x7]  ;;  %v516_v15 = vld [vmem:[#allocation2] sm:$0x3] }
  0x2b   :  { %897 = vmatprep.subr.msk.mxu0 %vm362_vm1, %v518_v6  ;;  %886 = vmatpush1.msk.msra.mxu1 %vm58_vm2, %v51_v8  ;;  %v519_v16 = vld [vmem:[#allocation4 + $0x58] sm:$0x7]  ;;  %v715_v17 = vld [vmem:[#allocation4 + $0x90] sm:$0xff]  ;;  %v716_v18 = vld [vmem:[#allocation4 + $0xa8] sm:$0xff]  ;;  %v1041_v20 = vmov 0.0|0.0   ;;  %v1136_v27 = vshrl.u32 %v679_v24, 7 }
  0x2c   :  { %887 = vmatmul.mubr.msk.f32.vlgmr.msra.gmra.mrb[0].mxu1 %vm54_vm3, %v50_v9  ;;  %918 = vmatprep.subr.mxu1 %v1039_v0  ;;  %v717_v19 = vld [vmem:[#allocation4 + $0xc0] sm:$0xff]  ;;  %v950_v21 = vpack.c.bf16 %v716_v18, %v715_v17  ;;  %v718_v22 = vld [vmem:[#allocation4 + $0xd8] sm:$0xff]  ;;  %vm720_vm6 = vcmask 261120   ;;  %vm832_vm7 = vcmask 125952   ;;  %vm867_vm8 = vcmask 1041409  }
  0x2d   :  { %919 = vmatpush3.msk.msra.mxu1 %vm58_vm2, %v53_v10  ;;  %920 = vmatprep.mubr.msk.f32.mxu1 %vm1040_vm5, %v1039_v0  ;;  %v953_v23 = vpack.c.bf16 %v718_v22, %v717_v19  ;;  %v1139_v30 = vsub.s32 0, %v1136_v27  ;;  %v677_v31 = vld [vmem:[#allocation4 + $0x60] ss:$8 sm:$0x7]  ;;  %v685_v35 = vsub.s32 1, %v1136_v27  ;;  %v689_v54 = vsub.s32 2, %v1136_v27 }
  0x2e   :  { %923 = vmatprep.subr.mxu1 %v1039_v0  ;;  %v709_v58 = vld [vmem:[#allocation4 + $0x61] ss:$0 sm:$0xff]  ;;  %v719_v6 = vld [vmem:[#allocation4 + $0x62] ss:$0 sm:$0xff]  ;;  %v794_v8 = vld [vmem:[#allocation4 + $0x63] ss:$0 sm:$0xff] }
  0x2f   :  { %v682_v36 = vrot.slane %v677_v31, %v1139_v30  ;;  %v686_v44 = vrot.slane %v677_v31, %v685_v35  ;;  %v690_v57 = vrot.slane %v677_v31, %v689_v54  ;;  %vm870_vm9 = vcmask 25600  }
  0x30   :  { %921 = vmatmul.mubr.msk.f32.vlgmr.msra.gmra.mrb[2].mxu1 %vm54_vm3, %v50_v9 }
  0x31   :  { %894 = vmatmul.mubr.msk.f32.vlgmr.msra.gmra.mrb[0].mxu0 %vm358_vm4, %v354_v11  ;;  %924 = vmatpush3.msra.mxu1 %v49_v13 }
  0x32   :  { %898 = vmatpush1.msk.msra.mxu0 %vm362_vm1, %v517_v12  ;;  %596 = vmatprep.mubr.f32.mxu0 %v1039_v0 }
  0x33   :  { %925 = vmatprep.mubr.msk.f32.mxu1 %vm1040_vm5, %v1039_v0  ;;  %928 = vmatprep.subr.mxu1 %v1039_v0 }
  0x34   :  { %926 = vmatmul.mubr.msk.f32.vlgmr.msra.gmra.mrb[4].mxu1 %vm209_vm0, %v46_v3  ;;  %949 = vmatprep.subr.bf16.mxu0 %v1041_v20  ;;  %v1042_v3 = vmov 1966171168  }
  0x35   :  { %929 = vmatpush3.msk.msra.mxu1 %vm362_vm1, %v357_v14  ;;  %930 = vmatprep.mubr.msk.f32.mxu1 %vm1040_vm5, %v1039_v0  ;;  %v799_v4 = vunpack.c.l.s4 %v1042_v3 }
  0x36   :  { %933 = vmatprep.subr.mxu1 %v1039_v0 }
  0x37   :  { %v800_v5 = vunpack.c.0.s8 %v799_v4 }
  0x38   :  { %931 = vmatmul.mubr.msk.f32.vlgmr.msra.gmra.mrb[6].mxu1 %vm358_vm4, %v354_v11 }
  0x39   :  { %899 = vmatmul.mubr.msk.f32.vlgmr.msra.gmra.mrb[0].mxu0 %vm358_vm4, %v516_v15  ;;  %934 = vmatpush3.msk.msra.mxu1 %vm362_vm1, %v519_v16  ;;  %v803_v10 = vsub.s32 %v800_v5, %v1136_v27  ;;  %v796_v16 = vld [vmem:[#allocation4 + $0x78] sm:$0xf] }
  0x3a   :  { %935 = vmatprep.mubr.msk.f32.mxu1 %vm1040_vm5, %v1039_v0  ;;  %946 = vmatprep.mubr.msk.f32.mxu0 %vm1040_vm5, %v1039_v0 }
  0x3b   :  { %951 = vmatpush3.bf16.msra.mxu0 %v950_v21 }
  0x3c   :  { %936 = vmatmul.mubr.msk.f32.vlgmr.msra.gmra.mrb[8].mxu1 %vm358_vm4, %v516_v15  ;;  %952 = vmatprep.subr.bf16.mxu0 %v1041_v20 }
  0x3f   :  { %954 = vmatpush3.bf16.msra.mxu0 %v953_v23 }
  0xff   :  { %v134_v25 = vpop.f32.mrb[0].mxu1 }
 0x100   :  { %v136_v26 = vpop.f32.mrb[1].mxu1 }
 0x103   :  { %v205_v28 = vpop.f32.mrb[2].mxu1 }
 0x104   :  { %v922_v29 = vpop.f32.mrb[3].mxu1 }
 0x107   :  { %v350_v32 = vpop.f32.mrb[4].mxu1 }
 0x108   :  { %v351_v33 = vadd.f32 %v350_v32, %v205_v28  ;;  %v927_v34 = vpop.f32.mrb[5].mxu1 }
 0x10b   :  { %v509_v38 = vpop.f32.mrb[6].mxu1 }
 0x10c   :  { %v598_v37 = vpop.f32.mrb[0].mxu0  ;;  %v515_v41 = vadd.f32 %v509_v38, %v351_v33  ;;  %v932_v42 = vpop.f32.mrb[7].mxu1  ;;  %v858_v38 = vand.u32 127, %v679_v24 }
 0x10d   :  { %v955_v39 = vadd.f32 %v598_v37, %v134_v25  ;;  %v600_v40 = vpop.f32.mrb[1].mxu0 }
 0x10e   :  { %v956_v43 = vadd.f32 %v600_v40, %v136_v26 }
 0x10f   :  { %v694_v45 = vadd.f32 %v955_v39, %v682_v36  ;;  %v669_v46 = vpop.f32.mrb[8].mxu1  ;;  %v861_v39 = vsub.s32 %v858_v38, %v1136_v27 }
 0x110   :  { %v675_v48 = vadd.f32 %v669_v46, %v515_v41  ;;  %v937_v49 = vpop.f32.mrb[9].mxu1  ;;  %v695_v50 = vadd.f32 %v956_v43, %v686_v44  ;;  %v875_v46 = vld [vmem:[#allocation4 + $0x64] ss:$0 sm:$0xff] }
 0x111   :  { %v902_v47 = vmul.f32 -1.442695, %v694_v45 }
 0x112   :  { %v903_v51 = vmul.f32 -1.442695, %v695_v50  ;;  %v696_v60 = vadd.f32 %v690_v57, %v675_v48 }
 0x113   :  { %969 = vpow2.f32 %v902_v47 }
 0x114   :  { %971 = vpow2.f32 %v903_v51 }
 0x11d   :  { %v970_v52 = vpop.eup %969 }
 0x11e   :  { %v700_v53 = vadd.f32 1.0, %v970_v52  ;;  %v972_v55 = vpop.eup %971 }
 0x11f   :  { %v706_v56 = vadd.f32 1.0, %v972_v55 }
 0x120   :  { %973 = vrcp.f32 %v700_v53 }
 0x121   :  { %975 = vrcp.f32 %v706_v56 }
 0x12a   :  { %v974_v59 = vpop.eup %973 }
 0x12b   :  { %v710_v61 = vmul.f32 %v974_v59, %v709_v58  ;;  %v976_v63 = vpop.eup %975 }
 0x12c   :  { %v713_v0 = vsub.f32 1.0, %v976_v63 }
 0x12d   :  { %v711_v62 = vadd.f32 %v710_v61, %v696_v60 }
 0x12f   :  { %977 = vtanh.f32 %v711_v62 }
 0x139   :  { %v978_v1 = vpop.eup %977 }
 0x13a   :  { %v714_v2 = vmul.f32 %v978_v1, %v713_v0 }
 0x13c   :  { %947 = vmatmul.mubr.msk.f32.vlgmr.msra.gmra.mrb[2].mxu0 %vm720_vm6, %v714_v2 }
 0x20f   :  { %v790_v7 = vpop.f32.mrb[2].mxu0 }
 0x210   :  { %v791_v9 = vadd.f32 %v790_v7, %v719_v6  ;;  %v948_v11 = vpop.f32.mrb[3].mxu0 }
 0x212   :  { %v795_v12 = vmul.f32 %v794_v8, %v791_v9 }
 0x214   :  { %v804_v13 = vrot.slane %v795_v12, %v803_v10 }
 0x216   :  { %v805_v14 = vcombine.high %v804_v13, %v804_v13  ;;  %v812_v15 = vrot.slane %v804_v13, %v803_v10 }
 0x218   :  { %v823_v17 = vrot.slane %v812_v15, %v1139_v30  ;;  %v819_v18 = vrot.slane %v805_v14, %v803_v10 }
 0x21a   :  { %v830_v19 = vadd.f32 %v823_v17, %v796_v16  ;;  %v827_v20 = vrot.slane %v819_v18, %v1139_v30 }
 0x21c   :  { %v833_v21 = vsel %vm832_vm7, %v830_v19, -inf  ;;  %v831_v22 = vadd.f32 %v827_v20, %v796_v16 }
 0x21d   :  { %834 = vmax.xlane.f32.xlu0 %v833_v21 }
 0x21e   :  { %v836_v23 = vsel %vm832_vm7, %v831_v22, -inf }
 0x221   :  { %837 = vmax.xlane.f32.xlu0 %v836_v23 }
 0x2aa   :  { %v835_v25 = vpop.xlane.xlu0 %834 }
 0x2ab   :  { %v839_v26 = vsub.f32 %v830_v19, %v835_v25 }
 0x2ad   :  { %v841_v28 = vmul.f32 1.442695, %v839_v26 }
 0x2ae   :  { %v838_v29 = vpop.xlane.xlu0 %837 }
 0x2af   :  { %979 = vpow2.f32 %v841_v28  ;;  %v840_v31 = vsub.f32 %v831_v22, %v838_v29 }
 0x2b1   :  { %v843_v32 = vmul.f32 1.442695, %v840_v31 }
 0x2b3   :  { %981 = vpow2.f32 %v843_v32 }
 0x2b9   :  { %v980_v33 = vpop.eup %979 }
 0x2ba   :  { %v845_v34 = vsel %vm832_vm7, %v980_v33, 0.0 }
 0x2bb   :  { %846 = vadd.xlane.f32.xlu1 %v845_v34 }
 0x2bd   :  { %v982_v30 = vpop.eup %981 }
 0x2be   :  { %v848_v35 = vsel %vm832_vm7, %v982_v30, 0.0 }
 0x2bf   :  { %849 = vadd.xlane.f32.xlu1 %v848_v35 }
 0x348   :  { %v847_v36 = vpop.xlane.xlu1 %846 }
 0x349   :  { %983 = vrcp.f32 %v847_v36 }
 0x34c   :  { %v850_v37 = vpop.xlane.xlu1 %849 }
 0x34d   :  { %985 = vrcp.f32 %v850_v37 }
 0x353   :  { %v984_v40 = vpop.eup %983 }
 0x354   :  { %v862_v42 = vrot.slane %v984_v40, %v861_v39 }
 0x357   :  { %v986_v41 = vpop.eup %985 }
 0x358   :  { %v866_v43 = vrot.slane %v986_v41, %v861_v39 }
 0x35a   :  { %v868_v44 = vsel %vm867_vm8, %v866_v43, %v862_v42 }
 0x35b   :  { %v871_v45 = vsel %vm870_vm9, %v868_v44, 0.0 }
 0x35c   :  { %872 = vadd.xlane.f32.xlu0 %v871_v45 }
 0x3e9   :  { %v873_v47 = vpop.xlane.xlu0 %872 }
 0x3ea   :  { %v874_v48 = vmul.f32 0.25, %v873_v47 }
 0x3ec   :  { %v876_v49 = vmul.f32 %v875_v46, %v874_v48 }
 0x3ee   :  { %v877_v50 = vadd.f32 %v876_v49, %v791_v9 }
 0x3f0   :  { %878 = vst [vmem:[%s1161_s5] sm:$0x3] %v877_v50 }
 0x3f1   :  { %883 = vsyncpa [#allocation3], 1 }
 0x3f2   :  { %884 = vsyncpa [#allocation5], 1 }

</bundles_post_ra>
